<compile_context>
chip_gen: v5e
topology: v5e:2x2
jax: 0.10.0
libtpu: 0.0.40
codegen_flags: <defaults>
</compile_context>

<pallas_src>
import math

import jax
import jax.numpy as jnp
from jax.experimental import pallas as pl
from jax.experimental.pallas import tpu as pltpu

# ---- config (LlamaConfig analogue, small synthetic sizes) -------------------
HIDDEN_SIZE = 32
NUM_HEADS = 4
NUM_KV_HEADS = 2
HEAD_DIM = HIDDEN_SIZE // NUM_HEADS            # 8
N_REP = NUM_HEADS // NUM_KV_HEADS              # 2 (exercises repeat_kv)
ROPE_BASE = 10000.0
BATCH = 2
SEQ = 8

QW = NUM_HEADS * HEAD_DIM                      # fused q width        (32)
KW = NUM_KV_HEADS * HEAD_DIM                   # fused k / v width    (16)


def _rotate_half_cols(w_t, n_heads, head_dim):
    """Return W' such that x @ W' == rotate_half(x @ w_t) per head.

    rotate_half is a signed permutation of each head's dims, so this is an
    exact (no rounding) signed column permutation of the weight matrix.
    """
    half = head_dim // 2
    w = w_t.reshape(w_t.shape[0], n_heads, head_dim)
    w_rot = jnp.concatenate([-w[..., half:], w[..., :half]], axis=-1)
    return w_rot.reshape(w_t.shape[0], n_heads * head_dim)


def llama_attention(hidden_states, wq_t, wk_t, wv_t, wo_t, cos, sin, attention_mask):
    """hidden_states: (B, S, H); w*_t: (in, out); cos/sin: (S, D); mask: (B,1,S,S)."""
    B, S, H = hidden_states.shape
    D = HEAD_DIM
    scale = 1.0 / math.sqrt(D)

    # Fuse q/k/v (+ their rotate_half images) into one weight matrix; fold the
    # softmax scale into the q columns.
    wq_s = wq_t * scale
    wqkv = jnp.concatenate(
        [wq_s, _rotate_half_cols(wq_s, NUM_HEADS, D),
         wk_t, _rotate_half_cols(wk_t, NUM_KV_HEADS, D),
         wv_t],
        axis=1,
    )                                                     # (H, 2*QW + 2*KW + KW)

    # Pre-tile RoPE tables across batch and heads so RoPE is one full-width
    # multiply-add in the kernel (hoisted out of any per-head work).
    cos_q = jnp.tile(cos, (B, NUM_HEADS))                 # (B*S, QW)
    sin_q = jnp.tile(sin, (B, NUM_HEADS))
    cos_k = jnp.tile(cos, (B, NUM_KV_HEADS))              # (B*S, KW)
    sin_k = jnp.tile(sin, (B, NUM_KV_HEADS))

    x2d = hidden_states.reshape(B * S, H)                 # flatten batch for the matmul

    def kernel(x_ref, wqkv_ref, wo_ref, cq_ref, sq_ref, ck_ref, sk_ref,
               mask_ref, o_ref):
        # Single fused projection on the MXU: [q | rot(q) | k | rot(k) | v].
        x = x_ref[...]                                                    # (B*S, H)
        qkv = jnp.dot(x, wqkv_ref[...], preferred_element_type=jnp.float32)

        q = qkv[:, :QW]
        q_rot = qkv[:, QW:2 * QW]
        k = qkv[:, 2 * QW:2 * QW + KW]
        k_rot = qkv[:, 2 * QW + KW:2 * QW + 2 * KW]
        v = qkv[:, 2 * QW + 2 * KW:]

        # Full-width RoPE (rotate_half already produced by the matmul above).
        q_emb = q * cq_ref[...] + q_rot * sq_ref[...]                     # (B*S, QW)
        k_emb = k * ck_ref[...] + k_rot * sk_ref[...]                     # (B*S, KW)

        wo = wo_ref[...]                                                  # (QW, H)
        mask = mask_ref[...]                                              # (B,1,S,S)

        outs = []
        for b in range(B):                                 # static unroll (tiny B)
            rows = slice(b * S, (b + 1) * S)
            q_b, k_b, v_b = q_emb[rows, :], k_emb[rows, :], v[rows, :]
            mask_b = mask[b, 0]                                           # (S, S)
            mask_stack = jnp.concatenate([mask_b] * N_REP, axis=0)        # (N_REP*S, S)

            out_b = jnp.zeros((S, H), jnp.float32)
            for g in range(NUM_KV_HEADS):                  # one attention per KV group
                kg = k_b[:, g * D:(g + 1) * D]                            # (S, D)
                vg = v_b[:, g * D:(g + 1) * D]                            # (S, D)
                # Stack the N_REP query heads of this group row-wise so the
                # group needs exactly one scores matmul and one p@v matmul.
                q_stack = jnp.concatenate(
                    [q_b[:, (g * N_REP + r) * D:(g * N_REP + r + 1) * D]
                     for r in range(N_REP)],
                    axis=0,
                )                                                         # (N_REP*S, D)
                scores = jnp.dot(q_stack, kg.T, preferred_element_type=jnp.float32)
                scores = scores + mask_stack               # scale already folded into Wq
                scores = scores - jnp.max(scores, axis=-1, keepdims=True)
                p = jnp.exp(scores)
                p = p * pl.reciprocal(jnp.sum(p, axis=-1, keepdims=True), approx=True)
                ctx = jnp.dot(p, vg, preferred_element_type=jnp.float32)  # (N_REP*S, D)

                # o_proj accumulated per head block — no attn concatenate.
                for r in range(N_REP):
                    h = g * N_REP + r
                    out_b = out_b + jnp.dot(ctx[r * S:(r + 1) * S, :],
                                            wo[h * D:(h + 1) * D, :],
                                            preferred_element_type=jnp.float32)
            outs.append(out_b)

        # Single lane-dense slab store of the whole output.
        o_ref[...] = jnp.concatenate(outs, axis=0).astype(o_ref.dtype)

    # No grid: the whole problem fits VMEM, so every operand is a single
    # whole-array VMEM block and there is no per-batch pipeline overhead.
    out2d = pl.pallas_call(
        kernel,
        out_shape=jax.ShapeDtypeStruct((B * S, H), jnp.float32),
        compiler_params=pltpu.CompilerParams(vmem_limit_bytes=32 * 1024 * 1024),
    )(x2d, wqkv, wo_t, cos_q, sin_q, cos_k, sin_k, attention_mask)
    return out2d.reshape(B, S, H)


def make_rope_tables(seq_len, dim, base=ROPE_BASE, dtype=jnp.float32):
    inv_freq = 1.0 / (base ** (jnp.arange(0, dim, 2, dtype=jnp.float32) / dim))
    t = jnp.arange(seq_len, dtype=jnp.float32)
    freqs = jnp.einsum("i,j->ij", t, inv_freq)             # (S, D/2)
    emb = jnp.concatenate([freqs, freqs], axis=-1)         # (S, D)
    # position_ids = arange(S) -> cos_cached[position_ids] is just the first S rows
    return jnp.cos(emb).astype(dtype), jnp.sin(emb).astype(dtype)


def reference_attention(x, wq_t, wk_t, wv_t, wo_t, cos, sin, mask):
    """Pure-JAX transcription of the PyTorch forward (pretraining_tp=1, no cache)."""
    B, S, H = x.shape
    D = HEAD_DIM
    q = (x @ wq_t).reshape(B, S, NUM_HEADS, D).transpose(0, 2, 1, 3)
    k = (x @ wk_t).reshape(B, S, NUM_KV_HEADS, D).transpose(0, 2, 1, 3)
    v = (x @ wv_t).reshape(B, S, NUM_KV_HEADS, D).transpose(0, 2, 1, 3)

    def rope(t):
        half = D // 2
        rot = jnp.concatenate([-t[..., half:], t[..., :half]], axis=-1)
        return t * cos[None, None] + rot * sin[None, None]

    q, k = rope(q), rope(k)
    k = jnp.repeat(k, N_REP, axis=1)                       # repeat_kv
    v = jnp.repeat(v, N_REP, axis=1)
    scores = jnp.einsum("bhqd,bhkd->bhqk", q, k) / math.sqrt(D) + mask
    p = jax.nn.softmax(scores.astype(jnp.float32), axis=-1)
    o = jnp.einsum("bhqk,bhkd->bhqd", p, v)
    o = o.transpose(0, 2, 1, 3).reshape(B, S, H)
    return o @ wo_t


if __name__ == "__main__":
    key = jax.random.PRNGKey(0)
    k_x, k_q, k_k, k_v, k_o = jax.random.split(key, 5)

    hidden_states = jax.random.normal(k_x, (BATCH, SEQ, HIDDEN_SIZE), dtype=jnp.float32)

    # nn.Linear(in, out, bias=False) weights, stored transposed -> (in, out)
    wq_t = 0.02 * jax.random.normal(k_q, (HIDDEN_SIZE, NUM_HEADS * HEAD_DIM), dtype=jnp.float32)
    wk_t = 0.02 * jax.random.normal(k_k, (HIDDEN_SIZE, NUM_KV_HEADS * HEAD_DIM), dtype=jnp.float32)
    wv_t = 0.02 * jax.random.normal(k_v, (HIDDEN_SIZE, NUM_KV_HEADS * HEAD_DIM), dtype=jnp.float32)
    wo_t = 0.02 * jax.random.normal(k_o, (NUM_HEADS * HEAD_DIM, HIDDEN_SIZE), dtype=jnp.float32)

    cos, sin = make_rope_tables(SEQ, HEAD_DIM)

    # Causal additive attention mask, shape (B, 1, S, S) as the module expects.
    causal = jnp.where(
        jnp.tril(jnp.ones((SEQ, SEQ), dtype=bool)), 0.0, jnp.float32(-1e9)
    )
    attention_mask = jnp.broadcast_to(causal[None, None], (BATCH, 1, SEQ, SEQ))

    out = llama_attention(hidden_states, wq_t, wk_t, wv_t, wo_t, cos, sin, attention_mask)
    out = jax.block_until_ready(out)

    ref = reference_attention(hidden_states, wq_t, wk_t, wv_t, wo_t, cos, sin, attention_mask)
    assert out.shape == (BATCH, SEQ, HIDDEN_SIZE)
    # Tolerance loosened slightly vs. the exact-f32 version to absorb the
    # approx (EUP) reciprocal in the softmax denominator.
    assert jnp.allclose(out, ref, atol=2e-3, rtol=2e-3), "mismatch vs reference"

    # TODO(synk): past_key_value concat / use_cache and pretraining_tp>1 paths are
    # not exercised; output_attentions returns None as in the default forward.
    print("KERNEL_OK")
</pallas_src>

<mosaic_0001>
module attributes {stable_mosaic.version = 11 : i64} {
  func.func @kernel(%arg0: memref<16x32xf32, #tpu.memory_space<vmem>>, %arg1: memref<32x112xf32, #tpu.memory_space<vmem>>, %arg2: memref<32x32xf32, #tpu.memory_space<vmem>>, %arg3: memref<16x32xf32, #tpu.memory_space<vmem>>, %arg4: memref<16x32xf32, #tpu.memory_space<vmem>>, %arg5: memref<16x16xf32, #tpu.memory_space<vmem>>, %arg6: memref<16x16xf32, #tpu.memory_space<vmem>>, %arg7: memref<2x1x8x8xf32, #tpu.memory_space<vmem>>, %arg8: memref<16x32xf32, #tpu.memory_space<vmem>>) attributes {dimension_semantics = [], scalar_prefetch = 0 : i64, scratch_operands = 0 : i64, tpu.core_type = #tpu.core_type<tc>} {
    %c0 = arith.constant 0 : index
    %c0_0 = arith.constant 0 : index
    %0 = vector.load %arg0[%c0, %c0_0] : memref<16x32xf32, #tpu.memory_space<vmem>>, vector<16x32xf32>
    %c0_1 = arith.constant 0 : index
    %c0_2 = arith.constant 0 : index
    %1 = vector.load %arg1[%c0_1, %c0_2] : memref<32x112xf32, #tpu.memory_space<vmem>>, vector<32x112xf32>
    %cst = arith.constant dense<0.000000e+00> : vector<16x112xf32>
    %2 = tpu.matmul %0, %1, %cst {dimension_numbers = #tpu.dot_dimension_numbers<[1], [0], [0], [1], [0, 0, 1, 1], [], []>} : vector<16x32xf32>, vector<32x112xf32>, vector<16x112xf32> -> vector<16x112xf32>
    %3 = vector.extract_strided_slice %2 {offsets = [0, 0], sizes = [16, 32], strides = [1, 1]} : vector<16x112xf32> to vector<16x32xf32>
    %4 = vector.extract_strided_slice %2 {offsets = [0, 32], sizes = [16, 32], strides = [1, 1]} : vector<16x112xf32> to vector<16x32xf32>
    %5 = vector.extract_strided_slice %2 {offsets = [0, 64], sizes = [16, 16], strides = [1, 1]} : vector<16x112xf32> to vector<16x16xf32>
    %6 = vector.extract_strided_slice %2 {offsets = [0, 80], sizes = [16, 16], strides = [1, 1]} : vector<16x112xf32> to vector<16x16xf32>
    %7 = vector.extract_strided_slice %2 {offsets = [0, 96], sizes = [16, 16], strides = [1, 1]} : vector<16x112xf32> to vector<16x16xf32>
    %c0_3 = arith.constant 0 : index
    %c0_4 = arith.constant 0 : index
    %8 = vector.load %arg3[%c0_3, %c0_4] : memref<16x32xf32, #tpu.memory_space<vmem>>, vector<16x32xf32>
    %9 = arith.mulf %3, %8 : vector<16x32xf32>
    %c0_5 = arith.constant 0 : index
    %c0_6 = arith.constant 0 : index
    %10 = vector.load %arg4[%c0_5, %c0_6] : memref<16x32xf32, #tpu.memory_space<vmem>>, vector<16x32xf32>
    %11 = arith.mulf %4, %10 : vector<16x32xf32>
    %12 = arith.addf %9, %11 : vector<16x32xf32>
    %c0_7 = arith.constant 0 : index
    %c0_8 = arith.constant 0 : index
    %13 = vector.load %arg5[%c0_7, %c0_8] : memref<16x16xf32, #tpu.memory_space<vmem>>, vector<16x16xf32>
    %14 = arith.mulf %5, %13 : vector<16x16xf32>
    %c0_9 = arith.constant 0 : index
    %c0_10 = arith.constant 0 : index
    %15 = vector.load %arg6[%c0_9, %c0_10] : memref<16x16xf32, #tpu.memory_space<vmem>>, vector<16x16xf32>
    %16 = arith.mulf %6, %15 : vector<16x16xf32>
    %17 = arith.addf %14, %16 : vector<16x16xf32>
    %c0_11 = arith.constant 0 : index
    %c0_12 = arith.constant 0 : index
    %18 = vector.load %arg2[%c0_11, %c0_12] : memref<32x32xf32, #tpu.memory_space<vmem>>, vector<32x32xf32>
    %c0_13 = arith.constant 0 : index
    %c0_14 = arith.constant 0 : index
    %c0_15 = arith.constant 0 : index
    %c0_16 = arith.constant 0 : index
    %19 = vector.load %arg7[%c0_13, %c0_14, %c0_15, %c0_16] : memref<2x1x8x8xf32, #tpu.memory_space<vmem>>, vector<2x1x8x8xf32>
    %20 = vector.extract_strided_slice %12 {offsets = [0, 0], sizes = [8, 32], strides = [1, 1]} : vector<16x32xf32> to vector<8x32xf32>
    %21 = vector.extract_strided_slice %17 {offsets = [0, 0], sizes = [8, 16], strides = [1, 1]} : vector<16x16xf32> to vector<8x16xf32>
    %22 = vector.extract_strided_slice %7 {offsets = [0, 0], sizes = [8, 16], strides = [1, 1]} : vector<16x16xf32> to vector<8x16xf32>
    %23 = vector.extract_strided_slice %19 {offsets = [0, 0, 0, 0], sizes = [1, 1, 8, 8], strides = [1, 1, 1, 1]} : vector<2x1x8x8xf32> to vector<1x1x8x8xf32>
    %24 = vector.shape_cast %23 : vector<1x1x8x8xf32> to vector<8x8xf32>
    %25 = tpu.concatenate %24, %24 in 0 : vector<8x8xf32>, vector<8x8xf32> -> vector<16x8xf32>
    %cst_17 = arith.constant 0.000000e+00 : f32
    %26 = vector.broadcast %cst_17 : f32 to vector<8x32xf32>
    %27 = vector.extract_strided_slice %21 {offsets = [0, 0], sizes = [8, 8], strides = [1, 1]} : vector<8x16xf32> to vector<8x8xf32>
    %28 = vector.extract_strided_slice %22 {offsets = [0, 0], sizes = [8, 8], strides = [1, 1]} : vector<8x16xf32> to vector<8x8xf32>
    %29 = vector.extract_strided_slice %20 {offsets = [0, 0], sizes = [8, 8], strides = [1, 1]} : vector<8x32xf32> to vector<8x8xf32>
    %30 = vector.extract_strided_slice %20 {offsets = [0, 8], sizes = [8, 8], strides = [1, 1]} : vector<8x32xf32> to vector<8x8xf32>
    %31 = tpu.concatenate %29, %30 in 0 : vector<8x8xf32>, vector<8x8xf32> -> vector<16x8xf32>
    %32 = tpu.transpose %27, [1, 0] : vector<8x8xf32> -> vector<8x8xf32>
    %cst_18 = arith.constant dense<0.000000e+00> : vector<16x8xf32>
    %33 = tpu.matmul %31, %32, %cst_18 {dimension_numbers = #tpu.dot_dimension_numbers<[1], [0], [0], [1], [0, 0, 1, 1], [], []>} : vector<16x8xf32>, vector<8x8xf32>, vector<16x8xf32> -> vector<16x8xf32>
    %34 = arith.addf %33, %25 : vector<16x8xf32>
    %cst_19 = arith.constant dense<0xFF800000> : vector<16xf32>
    %35 = vector.multi_reduction <maximumf>, %34, %cst_19 [1] : vector<16x8xf32> to vector<16xf32>
    %36 = vector.shape_cast %35 : vector<16xf32> to vector<16x1xf32>
    %37 = vector.broadcast %36 : vector<16x1xf32> to vector<16x8xf32>
    %38 = arith.subf %34, %37 : vector<16x8xf32>
    %39 = math.exp %38 : vector<16x8xf32>
    %cst_20 = arith.constant dense<0.000000e+00> : vector<16xf32>
    %40 = vector.multi_reduction <add>, %39, %cst_20 [1] : vector<16x8xf32> to vector<16xf32>
    %41 = vector.shape_cast %40 : vector<16xf32> to vector<16x1xf32>
    %42 = tpu.reciprocal %41 {approx = true} : vector<16x1xf32> -> vector<16x1xf32>
    %43 = vector.broadcast %42 : vector<16x1xf32> to vector<16x8xf32>
    %44 = arith.mulf %39, %43 : vector<16x8xf32>
    %cst_21 = arith.constant dense<0.000000e+00> : vector<16x8xf32>
    %45 = tpu.matmul %44, %28, %cst_21 {dimension_numbers = #tpu.dot_dimension_numbers<[1], [0], [0], [1], [0, 0, 1, 1], [], []>} : vector<16x8xf32>, vector<8x8xf32>, vector<16x8xf32> -> vector<16x8xf32>
    %46 = vector.extract_strided_slice %45 {offsets = [0, 0], sizes = [8, 8], strides = [1, 1]} : vector<16x8xf32> to vector<8x8xf32>
    %47 = vector.extract_strided_slice %18 {offsets = [0, 0], sizes = [8, 32], strides = [1, 1]} : vector<32x32xf32> to vector<8x32xf32>
    %cst_22 = arith.constant dense<0.000000e+00> : vector<8x32xf32>
    %48 = tpu.matmul %46, %47, %cst_22 {dimension_numbers = #tpu.dot_dimension_numbers<[1], [0], [0], [1], [0, 0, 1, 1], [], []>} : vector<8x8xf32>, vector<8x32xf32>, vector<8x32xf32> -> vector<8x32xf32>
    %49 = arith.addf %26, %48 : vector<8x32xf32>
    %50 = vector.extract_strided_slice %45 {offsets = [8, 0], sizes = [8, 8], strides = [1, 1]} : vector<16x8xf32> to vector<8x8xf32>
    %51 = vector.extract_strided_slice %18 {offsets = [8, 0], sizes = [8, 32], strides = [1, 1]} : vector<32x32xf32> to vector<8x32xf32>
    %cst_23 = arith.constant dense<0.000000e+00> : vector<8x32xf32>
    %52 = tpu.matmul %50, %51, %cst_23 {dimension_numbers = #tpu.dot_dimension_numbers<[1], [0], [0], [1], [0, 0, 1, 1], [], []>} : vector<8x8xf32>, vector<8x32xf32>, vector<8x32xf32> -> vector<8x32xf32>
    %53 = arith.addf %49, %52 : vector<8x32xf32>
    %54 = vector.extract_strided_slice %21 {offsets = [0, 8], sizes = [8, 8], strides = [1, 1]} : vector<8x16xf32> to vector<8x8xf32>
    %55 = vector.extract_strided_slice %22 {offsets = [0, 8], sizes = [8, 8], strides = [1, 1]} : vector<8x16xf32> to vector<8x8xf32>
    %56 = vector.extract_strided_slice %20 {offsets = [0, 16], sizes = [8, 8], strides = [1, 1]} : vector<8x32xf32> to vector<8x8xf32>
    %57 = vector.extract_strided_slice %20 {offsets = [0, 24], sizes = [8, 8], strides = [1, 1]} : vector<8x32xf32> to vector<8x8xf32>
    %58 = tpu.concatenate %56, %57 in 0 : vector<8x8xf32>, vector<8x8xf32> -> vector<16x8xf32>
    %59 = tpu.transpose %54, [1, 0] : vector<8x8xf32> -> vector<8x8xf32>
    %cst_24 = arith.constant dense<0.000000e+00> : vector<16x8xf32>
    %60 = tpu.matmul %58, %59, %cst_24 {dimension_numbers = #tpu.dot_dimension_numbers<[1], [0], [0], [1], [0, 0, 1, 1], [], []>} : vector<16x8xf32>, vector<8x8xf32>, vector<16x8xf32> -> vector<16x8xf32>
    %61 = arith.addf %60, %25 : vector<16x8xf32>
    %cst_25 = arith.constant dense<0xFF800000> : vector<16xf32>
    %62 = vector.multi_reduction <maximumf>, %61, %cst_25 [1] : vector<16x8xf32> to vector<16xf32>
    %63 = vector.shape_cast %62 : vector<16xf32> to vector<16x1xf32>
    %64 = vector.broadcast %63 : vector<16x1xf32> to vector<16x8xf32>
    %65 = arith.subf %61, %64 : vector<16x8xf32>
    %66 = math.exp %65 : vector<16x8xf32>
    %cst_26 = arith.constant dense<0.000000e+00> : vector<16xf32>
    %67 = vector.multi_reduction <add>, %66, %cst_26 [1] : vector<16x8xf32> to vector<16xf32>
    %68 = vector.shape_cast %67 : vector<16xf32> to vector<16x1xf32>
    %69 = tpu.reciprocal %68 {approx = true} : vector<16x1xf32> -> vector<16x1xf32>
    %70 = vector.broadcast %69 : vector<16x1xf32> to vector<16x8xf32>
    %71 = arith.mulf %66, %70 : vector<16x8xf32>
    %cst_27 = arith.constant dense<0.000000e+00> : vector<16x8xf32>
    %72 = tpu.matmul %71, %55, %cst_27 {dimension_numbers = #tpu.dot_dimension_numbers<[1], [0], [0], [1], [0, 0, 1, 1], [], []>} : vector<16x8xf32>, vector<8x8xf32>, vector<16x8xf32> -> vector<16x8xf32>
    %73 = vector.extract_strided_slice %72 {offsets = [0, 0], sizes = [8, 8], strides = [1, 1]} : vector<16x8xf32> to vector<8x8xf32>
    %74 = vector.extract_strided_slice %18 {offsets = [16, 0], sizes = [8, 32], strides = [1, 1]} : vector<32x32xf32> to vector<8x32xf32>
    %cst_28 = arith.constant dense<0.000000e+00> : vector<8x32xf32>
    %75 = tpu.matmul %73, %74, %cst_28 {dimension_numbers = #tpu.dot_dimension_numbers<[1], [0], [0], [1], [0, 0, 1, 1], [], []>} : vector<8x8xf32>, vector<8x32xf32>, vector<8x32xf32> -> vector<8x32xf32>
    %76 = arith.addf %53, %75 : vector<8x32xf32>
    %77 = vector.extract_strided_slice %72 {offsets = [8, 0], sizes = [8, 8], strides = [1, 1]} : vector<16x8xf32> to vector<8x8xf32>
    %78 = vector.extract_strided_slice %18 {offsets = [24, 0], sizes = [8, 32], strides = [1, 1]} : vector<32x32xf32> to vector<8x32xf32>
    %cst_29 = arith.constant dense<0.000000e+00> : vector<8x32xf32>
    %79 = tpu.matmul %77, %78, %cst_29 {dimension_numbers = #tpu.dot_dimension_numbers<[1], [0], [0], [1], [0, 0, 1, 1], [], []>} : vector<8x8xf32>, vector<8x32xf32>, vector<8x32xf32> -> vector<8x32xf32>
    %80 = arith.addf %76, %79 : vector<8x32xf32>
    %81 = vector.extract_strided_slice %12 {offsets = [8, 0], sizes = [8, 32], strides = [1, 1]} : vector<16x32xf32> to vector<8x32xf32>
    %82 = vector.extract_strided_slice %17 {offsets = [8, 0], sizes = [8, 16], strides = [1, 1]} : vector<16x16xf32> to vector<8x16xf32>
    %83 = vector.extract_strided_slice %7 {offsets = [8, 0], sizes = [8, 16], strides = [1, 1]} : vector<16x16xf32> to vector<8x16xf32>
    %84 = vector.extract_strided_slice %19 {offsets = [1, 0, 0, 0], sizes = [1, 1, 8, 8], strides = [1, 1, 1, 1]} : vector<2x1x8x8xf32> to vector<1x1x8x8xf32>
    %85 = vector.shape_cast %84 : vector<1x1x8x8xf32> to vector<8x8xf32>
    %86 = tpu.concatenate %85, %85 in 0 : vector<8x8xf32>, vector<8x8xf32> -> vector<16x8xf32>
    %cst_30 = arith.constant 0.000000e+00 : f32
    %87 = vector.broadcast %cst_30 : f32 to vector<8x32xf32>
    %88 = vector.extract_strided_slice %82 {offsets = [0, 0], sizes = [8, 8], strides = [1, 1]} : vector<8x16xf32> to vector<8x8xf32>
    %89 = vector.extract_strided_slice %83 {offsets = [0, 0], sizes = [8, 8], strides = [1, 1]} : vector<8x16xf32> to vector<8x8xf32>
    %90 = vector.extract_strided_slice %81 {offsets = [0, 0], sizes = [8, 8], strides = [1, 1]} : vector<8x32xf32> to vector<8x8xf32>
    %91 = vector.extract_strided_slice %81 {offsets = [0, 8], sizes = [8, 8], strides = [1, 1]} : vector<8x32xf32> to vector<8x8xf32>
    %92 = tpu.concatenate %90, %91 in 0 : vector<8x8xf32>, vector<8x8xf32> -> vector<16x8xf32>
    %93 = tpu.transpose %88, [1, 0] : vector<8x8xf32> -> vector<8x8xf32>
    %cst_31 = arith.constant dense<0.000000e+00> : vector<16x8xf32>
    %94 = tpu.matmul %92, %93, %cst_31 {dimension_numbers = #tpu.dot_dimension_numbers<[1], [0], [0], [1], [0, 0, 1, 1], [], []>} : vector<16x8xf32>, vector<8x8xf32>, vector<16x8xf32> -> vector<16x8xf32>
    %95 = arith.addf %94, %86 : vector<16x8xf32>
    %cst_32 = arith.constant dense<0xFF800000> : vector<16xf32>
    %96 = vector.multi_reduction <maximumf>, %95, %cst_32 [1] : vector<16x8xf32> to vector<16xf32>
    %97 = vector.shape_cast %96 : vector<16xf32> to vector<16x1xf32>
    %98 = vector.broadcast %97 : vector<16x1xf32> to vector<16x8xf32>
    %99 = arith.subf %95, %98 : vector<16x8xf32>
    %100 = math.exp %99 : vector<16x8xf32>
    %cst_33 = arith.constant dense<0.000000e+00> : vector<16xf32>
    %101 = vector.multi_reduction <add>, %100, %cst_33 [1] : vector<16x8xf32> to vector<16xf32>
    %102 = vector.shape_cast %101 : vector<16xf32> to vector<16x1xf32>
    %103 = tpu.reciprocal %102 {approx = true} : vector<16x1xf32> -> vector<16x1xf32>
    %104 = vector.broadcast %103 : vector<16x1xf32> to vector<16x8xf32>
    %105 = arith.mulf %100, %104 : vector<16x8xf32>
    %cst_34 = arith.constant dense<0.000000e+00> : vector<16x8xf32>
    %106 = tpu.matmul %105, %89, %cst_34 {dimension_numbers = #tpu.dot_dimension_numbers<[1], [0], [0], [1], [0, 0, 1, 1], [], []>} : vector<16x8xf32>, vector<8x8xf32>, vector<16x8xf32> -> vector<16x8xf32>
    %107 = vector.extract_strided_slice %106 {offsets = [0, 0], sizes = [8, 8], strides = [1, 1]} : vector<16x8xf32> to vector<8x8xf32>
    %108 = vector.extract_strided_slice %18 {offsets = [0, 0], sizes = [8, 32], strides = [1, 1]} : vector<32x32xf32> to vector<8x32xf32>
    %cst_35 = arith.constant dense<0.000000e+00> : vector<8x32xf32>
    %109 = tpu.matmul %107, %108, %cst_35 {dimension_numbers = #tpu.dot_dimension_numbers<[1], [0], [0], [1], [0, 0, 1, 1], [], []>} : vector<8x8xf32>, vector<8x32xf32>, vector<8x32xf32> -> vector<8x32xf32>
    %110 = arith.addf %87, %109 : vector<8x32xf32>
    %111 = vector.extract_strided_slice %106 {offsets = [8, 0], sizes = [8, 8], strides = [1, 1]} : vector<16x8xf32> to vector<8x8xf32>
    %112 = vector.extract_strided_slice %18 {offsets = [8, 0], sizes = [8, 32], strides = [1, 1]} : vector<32x32xf32> to vector<8x32xf32>
    %cst_36 = arith.constant dense<0.000000e+00> : vector<8x32xf32>
    %113 = tpu.matmul %111, %112, %cst_36 {dimension_numbers = #tpu.dot_dimension_numbers<[1], [0], [0], [1], [0, 0, 1, 1], [], []>} : vector<8x8xf32>, vector<8x32xf32>, vector<8x32xf32> -> vector<8x32xf32>
    %114 = arith.addf %110, %113 : vector<8x32xf32>
    %115 = vector.extract_strided_slice %82 {offsets = [0, 8], sizes = [8, 8], strides = [1, 1]} : vector<8x16xf32> to vector<8x8xf32>
    %116 = vector.extract_strided_slice %83 {offsets = [0, 8], sizes = [8, 8], strides = [1, 1]} : vector<8x16xf32> to vector<8x8xf32>
    %117 = vector.extract_strided_slice %81 {offsets = [0, 16], sizes = [8, 8], strides = [1, 1]} : vector<8x32xf32> to vector<8x8xf32>
    %118 = vector.extract_strided_slice %81 {offsets = [0, 24], sizes = [8, 8], strides = [1, 1]} : vector<8x32xf32> to vector<8x8xf32>
    %119 = tpu.concatenate %117, %118 in 0 : vector<8x8xf32>, vector<8x8xf32> -> vector<16x8xf32>
    %120 = tpu.transpose %115, [1, 0] : vector<8x8xf32> -> vector<8x8xf32>
    %cst_37 = arith.constant dense<0.000000e+00> : vector<16x8xf32>
    %121 = tpu.matmul %119, %120, %cst_37 {dimension_numbers = #tpu.dot_dimension_numbers<[1], [0], [0], [1], [0, 0, 1, 1], [], []>} : vector<16x8xf32>, vector<8x8xf32>, vector<16x8xf32> -> vector<16x8xf32>
    %122 = arith.addf %121, %86 : vector<16x8xf32>
    %cst_38 = arith.constant dense<0xFF800000> : vector<16xf32>
    %123 = vector.multi_reduction <maximumf>, %122, %cst_38 [1] : vector<16x8xf32> to vector<16xf32>
    %124 = vector.shape_cast %123 : vector<16xf32> to vector<16x1xf32>
    %125 = vector.broadcast %124 : vector<16x1xf32> to vector<16x8xf32>
    %126 = arith.subf %122, %125 : vector<16x8xf32>
    %127 = math.exp %126 : vector<16x8xf32>
    %cst_39 = arith.constant dense<0.000000e+00> : vector<16xf32>
    %128 = vector.multi_reduction <add>, %127, %cst_39 [1] : vector<16x8xf32> to vector<16xf32>
    %129 = vector.shape_cast %128 : vector<16xf32> to vector<16x1xf32>
    %130 = tpu.reciprocal %129 {approx = true} : vector<16x1xf32> -> vector<16x1xf32>
    %131 = vector.broadcast %130 : vector<16x1xf32> to vector<16x8xf32>
    %132 = arith.mulf %127, %131 : vector<16x8xf32>
    %cst_40 = arith.constant dense<0.000000e+00> : vector<16x8xf32>
    %133 = tpu.matmul %132, %116, %cst_40 {dimension_numbers = #tpu.dot_dimension_numbers<[1], [0], [0], [1], [0, 0, 1, 1], [], []>} : vector<16x8xf32>, vector<8x8xf32>, vector<16x8xf32> -> vector<16x8xf32>
    %134 = vector.extract_strided_slice %133 {offsets = [0, 0], sizes = [8, 8], strides = [1, 1]} : vector<16x8xf32> to vector<8x8xf32>
    %135 = vector.extract_strided_slice %18 {offsets = [16, 0], sizes = [8, 32], strides = [1, 1]} : vector<32x32xf32> to vector<8x32xf32>
    %cst_41 = arith.constant dense<0.000000e+00> : vector<8x32xf32>
    %136 = tpu.matmul %134, %135, %cst_41 {dimension_numbers = #tpu.dot_dimension_numbers<[1], [0], [0], [1], [0, 0, 1, 1], [], []>} : vector<8x8xf32>, vector<8x32xf32>, vector<8x32xf32> -> vector<8x32xf32>
    %137 = arith.addf %114, %136 : vector<8x32xf32>
    %138 = vector.extract_strided_slice %133 {offsets = [8, 0], sizes = [8, 8], strides = [1, 1]} : vector<16x8xf32> to vector<8x8xf32>
    %139 = vector.extract_strided_slice %18 {offsets = [24, 0], sizes = [8, 32], strides = [1, 1]} : vector<32x32xf32> to vector<8x32xf32>
    %cst_42 = arith.constant dense<0.000000e+00> : vector<8x32xf32>
    %140 = tpu.matmul %138, %139, %cst_42 {dimension_numbers = #tpu.dot_dimension_numbers<[1], [0], [0], [1], [0, 0, 1, 1], [], []>} : vector<8x8xf32>, vector<8x32xf32>, vector<8x32xf32> -> vector<8x32xf32>
    %141 = arith.addf %137, %140 : vector<8x32xf32>
    %142 = tpu.concatenate %80, %141 in 0 : vector<8x32xf32>, vector<8x32xf32> -> vector<16x32xf32>
    %c0_43 = arith.constant 0 : index
    %c0_44 = arith.constant 0 : index
    %143 = vector.load %arg8[%c0_43, %c0_44] : memref<16x32xf32, #tpu.memory_space<vmem>>, vector<16x32xf32>
    tpu.vector_store %arg8[%c0_43, %c0_44], %142 {strides = array<i32>} : memref<16x32xf32, #tpu.memory_space<vmem>>, vector<16x32xf32>,
    return
  }
}

</mosaic_0001>

<bundles_post_ra>
// kernel: tpu_custom_call.1
= control target key start
LH: loop header
LB: loop body
LE: loop exit
PB: predicated region body
PF: predicated region fallthrough
CT: control target
= control target key end

     0   :  { %13 = vsyncpa [#allocation3], 0  ;;  %s1352_s0 = inlined_call_operand.hbm [shape: f32[16,32], index: 0, kind: input, shape index: {}]   ;;  %s1353_s1 = inlined_call_operand.hbm [shape: f32[32,112], index: 1, kind: input, shape index: {}]   ;;  %s1354_s2 = inlined_call_operand.hbm [shape: f32[32,32], index: 2, kind: input, shape index: {}]   ;;  %s1355_s3 = inlined_call_operand.hbm [shape: f32[16,32], index: 3, kind: input, shape index: {}]   ;;  %s1356_s4 = inlined_call_operand.hbm [shape: f32[16,32], index: 4, kind: input, shape index: {}]   ;;  %s1357_s5 = inlined_call_operand.hbm [shape: f32[16,16], index: 5, kind: input, shape index: {}]   ;;  %s1358_s6 = inlined_call_operand.hbm [shape: f32[16,16], index: 6, kind: input, shape index: {}]   ;;  %s1359_s7 = inlined_call_operand.hbm [shape: f32[2,1,8,8], index: 7, kind: input, shape index: {}]   ;;  %s1360_s8 = inlined_call_operand.hbm [shape: f32[16,32], index: 8, kind: output, shape index: {}]  }
   0x1   :  { %14 = vsyncpa [#allocation6], 0 }
   0x2   :  { %15 = vsyncpa [#allocation9], 0 }
   0x3   :  { %16 = vsyncpa [#allocation12], 0 }
   0x4   :  { %17 = vsyncpa [#allocation15], 0 }
   0x5   :  { %18 = vsyncpa [#allocation4], 0  ;;  %s36_s29 = sshll.u32 %s1353_s1, 4  ;;  %s1138_s30 = smov [#allocation5]   ;;  %s37_s29 = int_to_ptr.hbm [resolvable:$true] %s36_s29 }
   0x6   :  { %s38_s9 = sshll.u32 %s1138_s30, 4  ;;  %s62_s12 = sshll.u32 %s1355_s3, 4  ;;  %s39_s9 = int_to_ptr.vmem [resolvable:$true] %s38_s9  ;;  %s63_s12 = int_to_ptr.hbm [resolvable:$true] %s62_s12 }
   0x7   :  { %s1139_s13 = smov 128   ;;  %s1140_s14 = smov 8  }
   0x8   :  { %44 = dma.hbm_to_vmem [thread:$0]  %s37_s29, 512, %s39_s9, [#allocation6], %s1139_s13, %s1139_s13, %s1140_s14  }
   0x9   :  { %s1141_s15 = smov [#allocation8]   ;;  %s88_s1 = sshll.u32 %s1357_s5, 4  ;;  %s89_s1 = int_to_ptr.hbm [resolvable:$true] %s88_s1 }
   0xa   :  { %s64_s16 = sshll.u32 %s1141_s15, 4  ;;  %s23_s20 = sshll.u32 %s1352_s0, 4  ;;  %s65_s16 = int_to_ptr.vmem [resolvable:$true] %s64_s16  ;;  %s24_s20 = int_to_ptr.hbm [resolvable:$true] %s23_s20 }
   0xb   :  { %70 = dma.hbm_to_vmem [thread:$0]  %s63_s12, 256, %s65_s16, [#allocation9], %s1139_s13, %s1139_s13, %s1140_s14  }
   0xc   :  { %s1142_s21 = smov [#allocation11]   ;;  %s1143_s23 = smov [#allocation2]  }
   0xd   :  { %s90_s22 = sshll.u32 %s1142_s21, 4  ;;  %s25_s5 = sshll.u32 %s1143_s23, 4  ;;  %s91_s22 = int_to_ptr.vmem [resolvable:$true] %s90_s22  ;;  %s26_s5 = int_to_ptr.vmem [resolvable:$true] %s25_s5 }
   0xe   :  { %96 = dma.hbm_to_vmem [thread:$0]  %s89_s1, 256, %s91_s22, [#allocation12], %s1139_s13, %s1139_s13, %s1140_s14  }
   0xf   :  { %s49_s26 = sshll.u32 %s1354_s2, 4  ;;  %s75_s28 = sshll.u32 %s1356_s4, 4  ;;  %s50_s26 = int_to_ptr.hbm [resolvable:$true] %s49_s26  ;;  %s76_s28 = int_to_ptr.hbm [resolvable:$true] %s75_s28 }
  0x10   :  { %31 = dma.hbm_to_vmem [thread:$0]  %s24_s20, 256, %s26_s5, [#allocation3], %s1139_s13, %s1139_s13, %s1140_s14  }
  0x11   :  { %s1144_s29 = smov [#allocation7]   ;;  %s1145_s9 = smov [#allocation10]  }
  0x12   :  { %s51_s30 = sshll.u32 %s1144_s29, 4  ;;  %s77_s2 = sshll.u32 %s1145_s9, 4  ;;  %s52_s30 = int_to_ptr.vmem [resolvable:$true] %s51_s30  ;;  %s78_s2 = int_to_ptr.vmem [resolvable:$true] %s77_s2 }
  0x13   :  { %57 = dma.hbm_to_vmem [thread:$0]  %s50_s26, 512, %s52_s30, [#allocation6], %s1139_s13, %s1139_s13, %s1140_s14  }
  0x14   :  { %s101_s12 = sshll.u32 %s1358_s6, 4  ;;  %s114_s16 = sshll.u32 %s1359_s7, 4  ;;  %s102_s12 = int_to_ptr.hbm [resolvable:$true] %s101_s12  ;;  %s115_s16 = int_to_ptr.hbm [resolvable:$true] %s114_s16 }
  0x15   :  { %83 = dma.hbm_to_vmem [thread:$0]  %s76_s28, 256, %s78_s2, [#allocation9], %s1139_s13, %s1139_s13, %s1140_s14  }
  0x16   :  { %s1146_s17 = smov [#allocation13]   ;;  %s1147_s1 = smov [#allocation14]  }
  0x17   :  { %s103_s18 = sshll.u32 %s1146_s17, 4  ;;  %s116_s6 = sshll.u32 %s1147_s1, 4  ;;  %s104_s18 = int_to_ptr.vmem [resolvable:$true] %s103_s18  ;;  %s117_s6 = int_to_ptr.vmem [resolvable:$true] %s116_s6 }
  0x18   :  { %109 = dma.hbm_to_vmem [thread:$0]  %s102_s12, 256, %s104_s18, [#allocation12], %s1139_s13, %s1139_s13, %s1140_s14  }
  0x19   :  { %122 = dma.hbm_to_vmem [thread:$0]  %s115_s16, 256, %s117_s6, [#allocation15], %s1139_s13, %s1139_s13, %s1140_s14  }
  0x1a   :  { %1126 = dma.done.wait [#allocation3], 256  }
  0x1b   :  { %1127 = vsyncadd [#allocation3], 4294967040 }
  0x1c   :  { %1128 = dma.done.wait [#allocation6], 1024  }
  0x1d   :  { %1129 = vsyncadd [#allocation6], 4294966272 }
  0x1e   :  { %1130 = dma.done.wait [#allocation9], 512  }
  0x1f   :  { %1131 = vsyncadd [#allocation9], 4294966784 }
  0x20   :  { %1132 = dma.done.wait [#allocation12], 512  }
  0x21   :  { %1133 = vsyncadd [#allocation12], 4294966784 }
  0x22   :  { %1134 = dma.done.wait [#allocation15], 256  }
  0x23   :  { %1135 = vsyncadd [#allocation15], 4294967040  ;;  %v160_v0 = vld [vmem:[#allocation5 + $0x18] sm:$0xff]  ;;  %v159_v1 = vld [vmem:[#allocation5 + $0x10] sm:$0xff]  ;;  %s1148_s7 = smov 80   ;;  %s1149_s3 = smov 64  }
  0x24   :  { %180 = vmatpush.msra.mxu0 %v160_v0  ;;  %v229_v2 = vld [vmem:[#allocation13] sm:$0xff]  ;;  %v158_v3 = vld [vmem:[#allocation5 + $0x8] sm:$0xff]  ;;  %v217_v4 = vld [vmem:[#allocation11] sm:$0xff]  ;;  %vm161_vm0 = vcmask 261120   ;;  %s1150_s19 = smov 32   ;;  %s1151_s20 = smov 112  }
  0x25   :  { %233 = vrot.lane.b32.xlu0 %v229_v2, %s1148_s7  ;;  %221 = vrot.lane.b32.xlu1 %v217_v4, %s1149_s3  ;;  %v157_v5 = vld [vmem:[#allocation5] sm:$0xff]  ;;  %v155_v6 = vld [vmem:[#allocation2] sm:$0xff]  ;;  %s1152_s21 = smov 96   ;;  %s1153_s22 = smov 120   ;;  %vm263_vm1 = vcmask 64512   ;;  %v156_v42 = vld [vmem:[#allocation2 + $0x8] sm:$0xff] }
  0x26   :  { %181 = vmatpush.msra.mxu0 %v159_v1  ;;  %v195_v7 = vld [vmem:[#allocation10] sm:$0xff]  ;;  %v191_v13 = vld [vmem:[#allocation8] sm:$0xff]  ;;  %s1154_s23 = smov 56   ;;  %s1155_s5 = smov 24   ;;  %v230_v43 = vld [vmem:[#allocation13 + $0x8] sm:$0xff] }
  0x27   :  { %v1261_v23 = vld [vmem:[#allocation14] sm:$0xff]  ;;  %v252_v52 = vld [vmem:[#allocation7 + $0x8] sm:$0xff]  ;;  %v196_v54 = vld [vmem:[#allocation10 + $0x8] sm:$0xff]  ;;  %s1156_s24 = smov [#allocation16]   ;;  %s812_s27 = sshll.u32 %s1360_s8, 4  ;;  %s813_s27 = int_to_ptr.hbm [resolvable:$true] %s812_s27 }
  0x28   :  { %182 = vmatpush.msra.mxu0 %v158_v3  ;;  %366 = vmatpush.msra.mxu3 %v252_v52  ;;  %v251_v53 = vld [vmem:[#allocation7] sm:$0xff]  ;;  %v218_v58 = vld [vmem:[#allocation11 + $0x8] sm:$0xff]  ;;  %s810_s25 = sshll.u32 %s1156_s24, 4  ;;  %s811_s25 = int_to_ptr.vmem [resolvable:$true] %s810_s25 }
  0x2a   :  { %183 = vmatpush.msra.mxu0 %v157_v5  ;;  %389 = vmatpush.msrb.mxu3 %v251_v53 }
  0x2b   :  { %829 = vmatmul.msk.f32.vlgmr.msra.gmra.mxu0 %vm161_vm0, %v155_v6 }
  0x2d   :  { %199 = vrot.lane.b32.xlu0 %v195_v7, %s1150_s19 }
  0x33   :  { %830 = vmatmul.msk.f32.gmra.mxu0 %vm161_vm0, %v156_v42 }
  0x97   :  { %v234_v8 = vpop.permute.xlu0 %233  ;;  %v222_v17 = vpop.permute.xlu1 %221 }
  0x9f   :  { %v200_v9 = vpop.permute.xlu0 %199 }
  0xa8   :  { %v185_v10 = vpop.f32.mrf.mxu0 }
  0xa9   :  { %v239_v11 = vmul.f32 %v234_v8, %v185_v10  ;;  %v205_v12 = vmul.f32 %v200_v9, %v185_v10  ;;  %v193_v14 = vmul.f32 %v191_v13, %v185_v10  ;;  %v227_v18 = vmul.f32 %v222_v17, %v185_v10  ;;  %v192_v17 = vld [vmem:[#allocation8 + $0x8] sm:$0xff] }
  0xab   :  { %243 = vrot.lane.b32.xlu1 %v239_v11, %s1151_s20  ;;  %209 = vrot.lane.b32.xlu2 %v205_v12, %s1152_s21  ;;  %v253_v12 = vld [vmem:[#allocation7 + $0x10] sm:$0xff] }
  0xb0   :  { %v1287_v63 = vpop.f32.mrf.mxu0 }
 0x105   :  { %v210_v15 = vpop.permute.xlu2 %209 }
 0x106   :  { %v215_v16 = vadd.f32 %v210_v15, %v193_v14 }
 0x108   :  { %258 = vrot.lane.b32.xlu0 %v215_v16, %s1153_s22 }
 0x11d   :  { %v244_v19 = vpop.permute.xlu1 %243 }
 0x11e   :  { %v249_v20 = vadd.f32 %v244_v19, %v227_v18  ;;  %v194_v18 = vmul.f32 %v192_v17, %v1287_v63 }
 0x120   :  { %261 = vrot.lane.b32.xlu2 %v249_v20, %s1149_s3 }
 0x17a   :  { %v262_v21 = vpop.permute.xlu2 %261  ;;  %v259_v22 = vpop.permute.xlu0 %258 }
 0x17b   :  { %831 = vmatpush.xpose.msk.msra.mxu1 %vm263_vm1, %v262_v21 }
 0x17e   :  { %832 = vmatmul.msk.f32.vlgmr.msra.gmra.mxu1 %vm263_vm1, %v215_v16 }
 0x17f   :  { %501 = vmatpush.msrb.mxu1 %v253_v12 }
 0x186   :  { %833 = vmatmul.msk.f32.gmra.mxu1 %vm263_vm1, %v259_v22 }
 0x1fb   :  { %v287_v24 = vpop.f32.mrf.mxu1 }
 0x1fc   :  { %v288_v25 = vadd.f32 %v287_v24, %v1261_v23 }
 0x1fe   :  { %v293_v26 = vsel %vm263_vm1, %v288_v25, -inf }
 0x1ff   :  { %294 = vmax.xlane.f32.xlu1 %v293_v26 }
 0x203   :  { %v290_v27 = vpop.f32.mrf.mxu1 }
 0x204   :  { %v291_v28 = vadd.f32 %v290_v27, %v1261_v23 }
 0x206   :  { %v296_v29 = vsel %vm263_vm1, %v291_v28, -inf }
 0x207   :  { %297 = vmax.xlane.f32.xlu2 %v296_v29 }
 0x218   :  { %316 = vrot.lane.b32.xlu1 %v185_v10, %s1150_s19 }
 0x272   :  { %v295_v30 = vpop.xlane.xlu1 %294 }
 0x273   :  { %v299_v31 = vsub.f32 %v288_v25, %v295_v30 }
 0x275   :  { %v301_v32 = vmul.f32 1.442695, %v299_v31 }
 0x277   :  { %878 = vpow2.f32 %v301_v32 }
 0x27a   :  { %v298_v33 = vpop.xlane.xlu2 %297 }
 0x27b   :  { %v300_v34 = vsub.f32 %v291_v28, %v298_v33 }
 0x27d   :  { %v879_v35 = vpop.eup %878  ;;  %v303_v36 = vmul.f32 1.442695, %v300_v34 }
 0x27e   :  { %v305_v37 = vsel %vm263_vm1, %v879_v35, 0.0 }
 0x27f   :  { %880 = vpow2.f32 %v303_v36  ;;  %306 = vadd.xlane.f32.xlu0 %v305_v37  ;;  %v1309_v36 = vld [vmem:[#allocation14 + $0x8] sm:$0xff] }
 0x285   :  { %v881_v38 = vpop.eup %880 }
 0x286   :  { %v308_v39 = vsel %vm263_vm1, %v881_v38, 0.0 }
 0x287   :  { %309 = vadd.xlane.f32.xlu2 %v308_v39 }
 0x28a   :  { %v317_v40 = vpop.permute.xlu1 %316 }
 0x28b   :  { %340 = vmatpush.msra.mxu2 %v317_v40 }
 0x293   :  { %394 = vrot.lane.b32.xlu0 %v215_v16, %s1151_s20 }
 0x29f   :  { %398 = vrot.lane.b32.xlu2 %v249_v20, %s1154_s23 }
 0x2a7   :  { %396 = vrot.lane.b32.xlu2 %v259_v22, %s1151_s20 }
 0x2af   :  { %451 = vrot.lane.b32.xlu2 %v185_v10, %s1155_s5 }
 0x2b7   :  { %235 = vrot.lane.b32.xlu2 %v230_v43, %s1148_s7 }
 0x2bf   :  { %201 = vrot.lane.b32.xlu2 %v196_v54, %s1150_s19 }
 0x2c7   :  { %223 = vrot.lane.b32.xlu2 %v218_v58, %s1149_s3 }
 0x2f2   :  { %v307_v41 = vpop.xlane.xlu0 %306 }
 0x2f3   :  { %882 = vrcp.f32 %v307_v41 }
 0x2f9   :  { %v883_v44 = vpop.eup %882 }
 0x2fa   :  { %v310_v45 = vpop.xlane.xlu2 %309  ;;  %v313_v46 = vmul.f32 %v883_v44, %v879_v35 }
 0x2fb   :  { %884 = vrcp.f32 %v310_v45 }
 0x2fc   :  { %834 = vmatmul.msk.f32.vlgmr.msra.gmra.mxu2 %vm263_vm1, %v313_v46  ;;  %v254_v46 = vld [vmem:[#allocation7 + $0x18] sm:$0xff] }
 0x2fd   :  { %525 = vmatpush.msrb.mxu0 %v254_v46 }
 0x301   :  { %v885_v47 = vpop.eup %884 }
 0x302   :  { %v399_v48 = vpop.permute.xlu2 %398  ;;  %v314_v49 = vmul.f32 %v885_v47, %v881_v38 }
 0x303   :  { %838 = vmatpush.xpose.msk.msrb.mxu2 %vm263_vm1, %v399_v48 }
 0x304   :  { %835 = vmatmul.msk.f32.gmra.mxu2 %vm263_vm1, %v314_v49 }
 0x305   :  { %v395_v50 = vpop.permute.xlu0 %394 }
 0x307   :  { %639 = vmatpush.msra.mxu2 %v252_v52 }
 0x30a   :  { %v397_v51 = vpop.permute.xlu2 %396 }
 0x30c   :  { %839 = vmatmul.msk.f32.vlgmr.msrb.gmra.mxu2 %vm263_vm1, %v395_v50 }
 0x312   :  { %v452_v57 = vpop.permute.xlu2 %451 }
 0x314   :  { %840 = vmatmul.msk.f32.gmra.mxu2 %vm263_vm1, %v397_v51 }
 0x31a   :  { %v236_v62 = vpop.permute.xlu2 %235 }
 0x31b   :  { %v240_v0 = vmul.f32 %v236_v62, %v1287_v63 }
 0x322   :  { %v202_v4 = vpop.permute.xlu2 %201 }
 0x323   :  { %v206_v11 = vmul.f32 %v202_v4, %v1287_v63 }
 0x32a   :  { %v224_v7 = vpop.permute.xlu2 %223 }
 0x32b   :  { %v228_v8 = vmul.f32 %v224_v7, %v1287_v63 }
 0x37f   :  { %v342_v55 = vpop.f32.mrf.mxu2 }
 0x387   :  { %v345_v56 = vpop.f32.mrf.mxu2 }
 0x388   :  { %836 = vmatmul.msk.f32.vlgmr.msra.gmra.mxu3 %vm263_vm1, %v345_v56 }
 0x389   :  { %475 = vmatpush.msra.mxu3 %v452_v57 }
 0x38f   :  { %v423_v59 = vpop.f32.mrf.mxu2 }
 0x390   :  { %v424_v60 = vadd.f32 %v423_v59, %v1261_v23  ;;  %837 = vmatmul.msk.f32.vlgmr.msrb.gmra.mxu3 %vm263_vm1, %v342_v55 }
 0x391   :  { %662 = vmatpush.msrb.mxu3 %v251_v53 }
 0x392   :  { %v429_v61 = vsel %vm263_vm1, %v424_v60, -inf }
 0x393   :  { %430 = vmax.xlane.f32.xlu1 %v429_v61 }
 0x397   :  { %v426_v21 = vpop.f32.mrf.mxu2 }
 0x398   :  { %v427_v22 = vadd.f32 %v426_v21, %v1261_v23 }
 0x39a   :  { %v432_v24 = vsel %vm263_vm1, %v427_v22, -inf }
 0x3ac   :  { %245 = vrot.lane.b32.xlu1 %v240_v0, %s1151_s20 }
 0x406   :  { %v431_v1 = vpop.xlane.xlu1 %430 }
 0x407   :  { %v435_v2 = vsub.f32 %v424_v60, %v431_v1 }
 0x409   :  { %v437_v3 = vmul.f32 1.442695, %v435_v2 }
 0x40b   :  { %886 = vpow2.f32 %v437_v3  ;;  %v368_v25 = vpop.f32.mrf.mxu3 }
 0x411   :  { %v887_v5 = vpop.eup %886 }
 0x412   :  { %v441_v6 = vsel %vm263_vm1, %v887_v5, 0.0 }
 0x413   :  { %442 = vadd.xlane.f32.xlu0 %v441_v6  ;;  %v391_v26 = vpop.f32.mrf.mxu3 }
 0x414   :  { %v392_v33 = vadd.f32 %v391_v26, %v368_v25 }
 0x41e   :  { %v246_v9 = vpop.permute.xlu1 %245 }
 0x41f   :  { %v1293_v10 = vadd.f32 %v246_v9, %v228_v8 }
 0x421   :  { %535 = vrot.lane.b32.xlu2 %v1293_v10, %s1149_s3 }
 0x427   :  { %211 = vrot.lane.b32.xlu0 %v206_v11, %s1152_s21 }
 0x47b   :  { %v536_v13 = vpop.permute.xlu2 %535 }
 0x47c   :  { %845 = vmatpush.xpose.msk.msra.mxu1 %vm263_vm1, %v536_v13 }
 0x486   :  { %v443_v14 = vpop.xlane.xlu0 %442 }
 0x487   :  { %888 = vrcp.f32 %v443_v14 }
 0x48d   :  { %v889_v15 = vpop.eup %888 }
 0x48e   :  { %v449_v16 = vmul.f32 %v889_v15, %v887_v5 }
 0x490   :  { %841 = vmatmul.msk.f32.vlgmr.msra.gmra.mxu3 %vm263_vm1, %v449_v16 }
 0x499   :  { %v212_v19 = vpop.permute.xlu0 %211 }
 0x49a   :  { %v216_v20 = vadd.f32 %v212_v19, %v194_v18 }
 0x49c   :  { %532 = vrot.lane.b32.xlu2 %v216_v20, %s1153_s22 }
 0x4c5   :  { %433 = vmax.xlane.f32.xlu2 %v432_v24 }
 0x4f6   :  { %v533_v28 = vpop.permute.xlu2 %532 }
 0x513   :  { %v477_v27 = vpop.f32.mrf.mxu3 }
 0x514   :  { %843 = vmatmul.msk.f32.vlgmr.msrb.gmra.mxu1 %vm263_vm1, %v477_v27 }
 0x515   :  { %774 = vmatpush.msrb.mxu1 %v253_v12 }
 0x51c   :  { %846 = vmatmul.msk.f32.vlgmr.msra.gmra.mxu1 %vm263_vm1, %v216_v20 }
 0x524   :  { %847 = vmatmul.msk.f32.gmra.mxu1 %vm263_vm1, %v533_v28 }
 0x538   :  { %v434_v29 = vpop.xlane.xlu2 %433 }
 0x539   :  { %v436_v30 = vsub.f32 %v427_v22, %v434_v29 }
 0x53b   :  { %v439_v31 = vmul.f32 1.442695, %v436_v30 }
 0x53d   :  { %890 = vpow2.f32 %v439_v31 }
 0x543   :  { %v891_v32 = vpop.eup %890 }
 0x544   :  { %v444_v23 = vsel %vm263_vm1, %v891_v32, 0.0 }
 0x545   :  { %445 = vadd.xlane.f32.xlu0 %v444_v23 }
 0x591   :  { %v503_v34 = vpop.f32.mrf.mxu1 }
 0x592   :  { %v506_v35 = vadd.f32 %v503_v34, %v392_v33 }
 0x599   :  { %v560_v37 = vpop.f32.mrf.mxu1 }
 0x59a   :  { %v561_v38 = vadd.f32 %v560_v37, %v1309_v36 }
 0x59c   :  { %v566_v39 = vsel %vm263_vm1, %v561_v38, -inf }
 0x59d   :  { %567 = vmax.xlane.f32.xlu1 %v566_v39 }
 0x5a1   :  { %v563_v40 = vpop.f32.mrf.mxu1 }
 0x5a2   :  { %v564_v41 = vadd.f32 %v563_v40, %v1309_v36 }
 0x5a4   :  { %v569_v42 = vsel %vm263_vm1, %v564_v41, -inf }
 0x5a5   :  { %570 = vmax.xlane.f32.xlu2 %v569_v42 }
 0x5b8   :  { %v446_v43 = vpop.xlane.xlu0 %445 }
 0x5b9   :  { %892 = vrcp.f32 %v446_v43 }
 0x5bd   :  { %589 = vrot.lane.b32.xlu2 %v1287_v63, %s1150_s19 }
 0x5bf   :  { %v893_v44 = vpop.eup %892 }
 0x5c0   :  { %v450_v45 = vmul.f32 %v893_v44, %v891_v32 }
 0x5c2   :  { %842 = vmatmul.msk.f32.gmra.mxu3 %vm263_vm1, %v450_v45 }
 0x610   :  { %v568_v47 = vpop.xlane.xlu1 %567 }
 0x611   :  { %v572_v48 = vsub.f32 %v561_v38, %v568_v47 }
 0x613   :  { %v574_v49 = vmul.f32 1.442695, %v572_v48 }
 0x615   :  { %894 = vpow2.f32 %v574_v49 }
 0x618   :  { %v571_v50 = vpop.xlane.xlu2 %570 }
 0x619   :  { %v573_v51 = vsub.f32 %v564_v41, %v571_v50 }
 0x61b   :  { %v895_v52 = vpop.eup %894  ;;  %v576_v53 = vmul.f32 1.442695, %v573_v51 }
 0x61c   :  { %v578_v54 = vsel %vm263_vm1, %v895_v52, 0.0 }
 0x61d   :  { %896 = vpow2.f32 %v576_v53  ;;  %579 = vadd.xlane.f32.xlu0 %v578_v54 }
 0x620   :  { %v590_v55 = vpop.permute.xlu2 %589 }
 0x621   :  { %613 = vmatpush.msra.mxu0 %v590_v55 }
 0x623   :  { %v897_v56 = vpop.eup %896 }
 0x624   :  { %v581_v57 = vsel %vm263_vm1, %v897_v56, 0.0 }
 0x625   :  { %582 = vadd.xlane.f32.xlu1 %v581_v57 }
 0x631   :  { %671 = vrot.lane.b32.xlu0 %v1293_v10, %s1154_s23 }
 0x639   :  { %669 = vrot.lane.b32.xlu0 %v533_v28, %s1151_s20 }
 0x63e   :  { %667 = vrot.lane.b32.xlu1 %v216_v20, %s1151_s20 }
 0x645   :  { %v480_v58 = vpop.f32.mrf.mxu3 }
 0x646   :  { %844 = vmatmul.msk.f32.vlgmr.msrb.gmra.mxu0 %vm263_vm1, %v480_v58 }
 0x647   :  { %798 = vmatpush.msrb.mxu0 %v254_v46 }
 0x690   :  { %v580_v59 = vpop.xlane.xlu0 %579 }
 0x691   :  { %898 = vrcp.f32 %v580_v59 }
 0x697   :  { %v899_v60 = vpop.eup %898 }
 0x698   :  { %v586_v61 = vmul.f32 %v899_v60, %v895_v52  ;;  %v583_v62 = vpop.xlane.xlu1 %582 }
 0x699   :  { %900 = vrcp.f32 %v583_v62 }
 0x69a   :  { %848 = vmatmul.msk.f32.vlgmr.msra.gmra.mxu0 %vm263_vm1, %v586_v61 }
 0x69f   :  { %v901_v0 = vpop.eup %900 }
 0x6a0   :  { %v587_v1 = vmul.f32 %v901_v0, %v897_v56 }
 0x6a2   :  { %849 = vmatmul.msk.f32.gmra.mxu0 %vm263_vm1, %v587_v1 }
 0x6a3   :  { %v672_v2 = vpop.permute.xlu0 %671 }
 0x6a4   :  { %852 = vmatpush.xpose.msk.msrb.mxu2 %vm263_vm1, %v672_v2 }
 0x6ab   :  { %v670_v8 = vpop.permute.xlu0 %669 }
 0x6b0   :  { %v668_v7 = vpop.permute.xlu1 %667 }
 0x6c3   :  { %v527_v3 = vpop.f32.mrf.mxu0 }
 0x6c4   :  { %v530_v4 = vadd.f32 %v527_v3, %v506_v35 }
 0x6c6   :  { %804 = vst.msk [vmem:[#allocation16] sm:$0xff] %vm161_vm0, %v530_v4 }
 0x717   :  { %v615_v5 = vpop.f32.mrf.mxu0 }
 0x718   :  { %851 = vmatmul.msk.f32.vlgmr.msrb.gmra.mxu3 %vm263_vm1, %v615_v5 }
 0x71f   :  { %v618_v6 = vpop.f32.mrf.mxu0 }
 0x720   :  { %850 = vmatmul.msk.f32.vlgmr.msra.gmra.mxu2 %vm263_vm1, %v618_v6 }
 0x728   :  { %853 = vmatmul.msk.f32.vlgmr.msrb.gmra.mxu2 %vm263_vm1, %v668_v7 }
 0x730   :  { %854 = vmatmul.msk.f32.gmra.mxu2 %vm263_vm1, %v670_v8 }
 0x79b   :  { %v664_v23 = vpop.f32.mrf.mxu3 }
 0x7a3   :  { %v641_v9 = vpop.f32.mrf.mxu2 }
 0x7ab   :  { %v696_v10 = vpop.f32.mrf.mxu2 }
 0x7ac   :  { %v697_v11 = vadd.f32 %v696_v10, %v1309_v36 }
 0x7ae   :  { %v702_v12 = vsel %vm263_vm1, %v697_v11, -inf }
 0x7af   :  { %703 = vmax.xlane.f32.xlu2 %v702_v12 }
 0x7b3   :  { %v699_v13 = vpop.f32.mrf.mxu2 }
 0x7b4   :  { %v700_v14 = vadd.f32 %v699_v13, %v1309_v36  ;;  %v665_v36 = vadd.f32 %v664_v23, %v641_v9 }
 0x7b6   :  { %v705_v15 = vsel %vm263_vm1, %v700_v14, -inf }
 0x7b7   :  { %706 = vmax.xlane.f32.xlu1 %v705_v15 }
 0x7d0   :  { %724 = vrot.lane.b32.xlu1 %v1287_v63, %s1155_s5 }
 0x822   :  { %v704_v16 = vpop.xlane.xlu2 %703 }
 0x823   :  { %v708_v17 = vsub.f32 %v697_v11, %v704_v16 }
 0x825   :  { %v710_v18 = vmul.f32 1.442695, %v708_v17 }
 0x827   :  { %902 = vpow2.f32 %v710_v18 }
 0x82a   :  { %v707_v19 = vpop.xlane.xlu1 %706 }
 0x82b   :  { %v709_v20 = vsub.f32 %v700_v14, %v707_v19 }
 0x82d   :  { %v903_v21 = vpop.eup %902  ;;  %v712_v22 = vmul.f32 1.442695, %v709_v20 }
 0x82e   :  { %v714_v24 = vsel %vm263_vm1, %v903_v21, 0.0 }
 0x82f   :  { %904 = vpow2.f32 %v712_v22  ;;  %715 = vadd.xlane.f32.xlu0 %v714_v24 }
 0x835   :  { %v905_v25 = vpop.eup %904 }
 0x836   :  { %v717_v26 = vsel %vm263_vm1, %v905_v25, 0.0 }
 0x837   :  { %718 = vadd.xlane.f32.xlu2 %v717_v26 }
 0x842   :  { %v725_v27 = vpop.permute.xlu1 %724 }
 0x843   :  { %748 = vmatpush.msra.mxu3 %v725_v27 }
 0x8a2   :  { %v716_v28 = vpop.xlane.xlu0 %715 }
 0x8a3   :  { %906 = vrcp.f32 %v716_v28 }
 0x8a9   :  { %v907_v63 = vpop.eup %906 }
 0x8aa   :  { %v722_v29 = vmul.f32 %v907_v63, %v903_v21  ;;  %v719_v30 = vpop.xlane.xlu2 %718 }
 0x8ab   :  { %908 = vrcp.f32 %v719_v30 }
 0x8ac   :  { %855 = vmatmul.msk.f32.vlgmr.msra.gmra.mxu3 %vm263_vm1, %v722_v29 }
 0x8b1   :  { %v909_v31 = vpop.eup %908 }
 0x8b2   :  { %v723_v32 = vmul.f32 %v909_v31, %v905_v25 }
 0x8b4   :  { %856 = vmatmul.msk.f32.gmra.mxu3 %vm263_vm1, %v723_v32 }
 0x92f   :  { %v750_v33 = vpop.f32.mrf.mxu3 }
 0x930   :  { %857 = vmatmul.msk.f32.vlgmr.msrb.gmra.mxu1 %vm263_vm1, %v750_v33 }
 0x937   :  { %v753_v34 = vpop.f32.mrf.mxu3 }
 0x938   :  { %858 = vmatmul.msk.f32.vlgmr.msrb.gmra.mxu0 %vm263_vm1, %v753_v34 }
 0x9ad   :  { %v776_v35 = vpop.f32.mrf.mxu1 }
 0x9ae   :  { %v779_v37 = vadd.f32 %v776_v35, %v665_v36 }
 0x9b5   :  { %v800_v38 = vpop.f32.mrf.mxu0 }
 0x9b6   :  { %v803_v39 = vadd.f32 %v800_v38, %v779_v37 }
 0x9b8   :  { %805 = vst.msk [vmem:[#allocation16 + $0x8] sm:$0xff] %vm161_vm0, %v803_v39 }
 0x9b9   :  { %818 = dma.vmem_to_hbm [thread:$0]  %s811_s25, 256, %s813_s27, [#allocation4], %s1139_s13, %s1139_s13, %s1140_s14  }
 0x9ba   :  { %1136 = dma.done.wait [#allocation4], 256  }
 0x9bb   :  { %1137 = vsyncadd [#allocation4], 4294967040 }
 0x9bc   :  { %823 = vsyncpa [#allocation3], 1 }
 0x9bd   :  { %824 = vsyncpa [#allocation6], 1 }
 0x9be   :  { %825 = vsyncpa [#allocation9], 1 }
 0x9bf   :  { %826 = vsyncpa [#allocation12], 1 }
 0x9c0   :  { %827 = vsyncpa [#allocation15], 1 }
 0x9c1   :  { %828 = vsyncpa [#allocation4], 1 }

</bundles_post_ra>
